<compile_context>
chip_gen: v7x
topology: tpu7x:2x2x1
jax: 0.10.0
libtpu: 0.0.40
codegen_flags: <defaults>
</compile_context>

<pallas_src>
import functools

import jax
import jax.numpy as jnp
from jax import lax
from jax.experimental import pallas as pl
from jax.experimental.pallas import tpu as pltpu

LANE = 128      # lane width / MXU-friendly padding target (works on v5e/v6e/v7x)
SUBLANE = 8     # f32 sublane count


def _round_up(x: int, m: int) -> int:
    return ((x + m - 1) // m) * m


def _make_attention_head_kernel(s_valid: int, s_pad: int):
    """Build the kernel; s_valid/s_pad are static (trace-time) constants."""
    needs_seq_mask = s_pad != s_valid

    def kernel(q_ref, k_ref, v_ref,
               wq_ref, bq_ref,
               wk_ref, bk_ref,
               wv_ref, bv_ref,
               o_ref):
        # Refs (batch dim squeezed away by the BlockSpec):
        #   q/k/v_ref : (S_pad, Din_p)        activations, zero-padded features
        #   w*_ref    : (Din_p, Dout_p)       pre-transposed (matmul-ready) weights
        #   b*_ref    : (1, Dout_p)           biases
        #   o_ref     : (S_pad, Dout_p)
        x_q = q_ref[...]
        x_k = k_ref[...]
        x_v = v_ref[...]

        # Linear projections — plain MXU dots (weights already (in, out)).
        # wq/bq carry the 1/sqrt(dim_query) attention scale folded in.
        Q = jnp.dot(x_q, wq_ref[...], preferred_element_type=jnp.float32) + bq_ref[...]
        K = jnp.dot(x_k, wk_ref[...], preferred_element_type=jnp.float32) + bk_ref[...]
        V = jnp.dot(x_v, wv_ref[...], preferred_element_type=jnp.float32) + bv_ref[...]

        # Scores: contract the feature dim of Q with the feature dim of K directly
        # (no explicit K transpose).  Zero-padded feature columns contribute 0.
        scores = lax.dot_general(
            Q, K, (((1,), (1,)), ((), ())),
            preferred_element_type=jnp.float32)                    # (S_pad, S_pad)

        if needs_seq_mask:
            # Padded key rows would otherwise carry the key bias -> mask them out.
            key_ids = lax.broadcasted_iota(jnp.int32, scores.shape, 1)
            scores = jnp.where(key_ids < s_valid, scores, jnp.float32(-1e30))

        # Numerically-stable softmax; reciprocal goes to the (otherwise idle) EUP.
        m = jnp.max(scores, axis=-1, keepdims=True)
        e = jnp.exp(scores - m)
        denom = jnp.sum(e, axis=-1, keepdims=True)
        attn = e * pl.reciprocal(denom, approx=True)

        out = jnp.dot(attn, V, preferred_element_type=jnp.float32)  # (S_pad, Dout_p)
        o_ref[...] = out.astype(o_ref.dtype)

    return kernel


@functools.partial(jax.jit, static_argnames=())
def attention_head_pallas(query, key, value, params):
    """query/key/value: (B, S, dim_in) float32. Returns (B, S, dim_key)."""
    B, S, dim_in = query.shape
    wq, bq = params["wq"], params["bq"]
    wk, bk = params["wk"], params["bk"]
    wv, bv = params["wv"], params["bv"]
    dim_query = wq.shape[0]
    dim_key = wk.shape[0]
    assert dim_query == dim_key, "Q·K^T requires dim_query == dim_key"

    # Lane-dense padded sizes.
    din_p = _round_up(dim_in, LANE)
    dout_p = _round_up(max(dim_query, dim_key), LANE)
    s_pad = _round_up(S, SUBLANE)

    # Attention scale (from the ORIGINAL dim_query), folded into the Q projection.
    scale = jnp.float32(dim_query) ** 0.5

    def prep_w(w, b, fold_scale):
        wt = w.T.astype(jnp.float32)                 # (dim_in, dim_out) matmul-ready
        bb = b.astype(jnp.float32)
        if fold_scale:
            wt = wt / scale
            bb = bb / scale
        wt = jnp.pad(wt, ((0, din_p - wt.shape[0]), (0, dout_p - wt.shape[1])))
        bb = jnp.pad(bb, (0, dout_p - bb.shape[0])).reshape(1, dout_p)
        return wt, bb

    wq_p, bq_p = prep_w(wq, bq, True)
    wk_p, bk_p = prep_w(wk, bk, False)
    wv_p, bv_p = prep_w(wv, bv, False)

    def pad_act(x):
        return jnp.pad(x.astype(jnp.float32),
                       ((0, 0), (0, s_pad - S), (0, din_p - dim_in)))

    q_p, k_p, v_p = pad_act(query), pad_act(key), pad_act(value)

    act_spec = pl.BlockSpec((pl.Squeezed(), s_pad, din_p), lambda b: (b, 0, 0))
    w_spec = pl.BlockSpec((din_p, dout_p), lambda b: (0, 0))
    b_spec = pl.BlockSpec((1, dout_p), lambda b: (0, 0))
    out_spec = pl.BlockSpec((pl.Squeezed(), s_pad, dout_p), lambda b: (b, 0, 0))

    kernel = _make_attention_head_kernel(S, s_pad)

    out_p = pl.pallas_call(
        kernel,
        out_shape=jax.ShapeDtypeStruct((B, s_pad, dout_p), jnp.float32),
        grid_spec=pltpu.PrefetchScalarGridSpec(
            num_scalar_prefetch=0,
            grid=(B,),
            in_specs=[
                act_spec, act_spec, act_spec,
                w_spec, b_spec,
                w_spec, b_spec,
                w_spec, b_spec,
            ],
            out_specs=out_spec,
        ),
        compiler_params=pltpu.CompilerParams(
            dimension_semantics=("parallel",)),
    )(q_p, k_p, v_p, wq_p, bq_p, wk_p, bk_p, wv_p, bv_p)

    # Strip the lane / sublane padding.
    return out_p[:, :S, :dim_key]

# TODO(synk): for large S, switch to flash-style q/kv grid tiling with an
# online-softmax accumulator instead of materializing the full (S, S) scores.


def reference_attention_head(query, key, value, params):
    """Pure-JAX reference matching the PyTorch module semantics."""
    Q = query @ params["wq"].T + params["bq"]
    K = key @ params["wk"].T + params["bk"]
    V = value @ params["wv"].T + params["bv"]
    scale = Q.shape[-1] ** 0.5
    scores = jnp.einsum("bqd,bkd->bqk", Q, K) / scale
    attn = jax.nn.softmax(scores, axis=-1)
    return jnp.einsum("bqk,bkd->bqd", attn, V)


def init_params(key, dim_in, dim_query, dim_key):
    ks = jax.random.split(key, 6)
    bound = 1.0 / (dim_in ** 0.5)
    return {
        "wq": jax.random.uniform(ks[0], (dim_query, dim_in), jnp.float32, -bound, bound),
        "bq": jax.random.uniform(ks[1], (dim_query,), jnp.float32, -bound, bound),
        "wk": jax.random.uniform(ks[2], (dim_key, dim_in), jnp.float32, -bound, bound),
        "bk": jax.random.uniform(ks[3], (dim_key,), jnp.float32, -bound, bound),
        "wv": jax.random.uniform(ks[4], (dim_key, dim_in), jnp.float32, -bound, bound),
        "bv": jax.random.uniform(ks[5], (dim_key,), jnp.float32, -bound, bound),
    }


if __name__ == "__main__":
    B, S, dim_in = 2, 8, 32
    dim_query = dim_key = 32   # must match for Q·K^T as in the PyTorch module

    root = jax.random.PRNGKey(0)
    k_p, k_q, k_k, k_v = jax.random.split(root, 4)
    params = init_params(k_p, dim_in, dim_query, dim_key)

    query = jax.random.normal(k_q, (B, S, dim_in), jnp.float32)
    key = jax.random.normal(k_k, (B, S, dim_in), jnp.float32)
    value = jax.random.normal(k_v, (B, S, dim_in), jnp.float32)

    out = attention_head_pallas(query, key, value, params)
    out = jax.block_until_ready(out)

    ref = reference_attention_head(query, key, value, params)
    assert out.shape == (B, S, dim_key)
    # approx reciprocal in softmax -> slightly looser tolerance than exact divide
    assert jnp.allclose(out, ref, atol=2e-3, rtol=2e-3), "mismatch vs reference"

    print("KERNEL_OK")
</pallas_src>

<mosaic_0001>
module attributes {stable_mosaic.version = 11 : i64} {
  func.func @kernel(%arg0: i32, %arg1: memref<1x8x128xf32, #tpu.memory_space<vmem>>, %arg2: memref<1x8x128xf32, #tpu.memory_space<vmem>>, %arg3: memref<1x8x128xf32, #tpu.memory_space<vmem>>, %arg4: memref<128x128xf32, #tpu.memory_space<vmem>>, %arg5: memref<1x128xf32, #tpu.memory_space<vmem>>, %arg6: memref<128x128xf32, #tpu.memory_space<vmem>>, %arg7: memref<1x128xf32, #tpu.memory_space<vmem>>, %arg8: memref<128x128xf32, #tpu.memory_space<vmem>>, %arg9: memref<1x128xf32, #tpu.memory_space<vmem>>, %arg10: memref<1x8x128xf32, #tpu.memory_space<vmem>>) attributes {dimension_semantics = [#tpu.dimension_semantics<parallel>], iteration_bounds = array<i64: 2>, scalar_prefetch = 0 : i64, scratch_operands = 0 : i64, tpu.core_type = #tpu.core_type<tc>, window_params = [{transform_indices = @transform_0, window_bounds = array<i64: 1, 8, 128>}, {transform_indices = @transform_1, window_bounds = array<i64: 1, 8, 128>}, {transform_indices = @transform_2, window_bounds = array<i64: 1, 8, 128>}, {pipeline_mode = #tpu.pipeline_mode<synchronous>, transform_indices = @transform_3, window_bounds = array<i64: 128, 128>}, {pipeline_mode = #tpu.pipeline_mode<synchronous>, transform_indices = @transform_4, window_bounds = array<i64: 1, 128>}, {pipeline_mode = #tpu.pipeline_mode<synchronous>, transform_indices = @transform_5, window_bounds = array<i64: 128, 128>}, {pipeline_mode = #tpu.pipeline_mode<synchronous>, transform_indices = @transform_6, window_bounds = array<i64: 1, 128>}, {pipeline_mode = #tpu.pipeline_mode<synchronous>, transform_indices = @transform_7, window_bounds = array<i64: 128, 128>}, {pipeline_mode = #tpu.pipeline_mode<synchronous>, transform_indices = @transform_8, window_bounds = array<i64: 1, 128>}, {transform_indices = @transform_9, window_bounds = array<i64: 1, 8, 128>}]} {
    %c0 = arith.constant 0 : index
    %c0_0 = arith.constant 0 : index
    %c0_1 = arith.constant 0 : index
    %0 = vector.load %arg1[%c0, %c0_0, %c0_1] : memref<1x8x128xf32, #tpu.memory_space<vmem>>, vector<1x8x128xf32>
    %1 = vector.shape_cast %0 : vector<1x8x128xf32> to vector<8x128xf32>
    %c0_2 = arith.constant 0 : index
    %c0_3 = arith.constant 0 : index
    %c0_4 = arith.constant 0 : index
    %2 = vector.load %arg2[%c0_2, %c0_3, %c0_4] : memref<1x8x128xf32, #tpu.memory_space<vmem>>, vector<1x8x128xf32>
    %3 = vector.shape_cast %2 : vector<1x8x128xf32> to vector<8x128xf32>
    %c0_5 = arith.constant 0 : index
    %c0_6 = arith.constant 0 : index
    %c0_7 = arith.constant 0 : index
    %4 = vector.load %arg3[%c0_5, %c0_6, %c0_7] : memref<1x8x128xf32, #tpu.memory_space<vmem>>, vector<1x8x128xf32>
    %5 = vector.shape_cast %4 : vector<1x8x128xf32> to vector<8x128xf32>
    %c0_8 = arith.constant 0 : index
    %c0_9 = arith.constant 0 : index
    %6 = vector.load %arg4[%c0_8, %c0_9] : memref<128x128xf32, #tpu.memory_space<vmem>>, vector<128x128xf32>
    %cst = arith.constant dense<0.000000e+00> : vector<8x128xf32>
    %7 = tpu.matmul %1, %6, %cst {dimension_numbers = #tpu.dot_dimension_numbers<[1], [0], [0], [1], [0, 0, 1, 1], [], []>} : vector<8x128xf32>, vector<128x128xf32>, vector<8x128xf32> -> vector<8x128xf32>
    %c0_10 = arith.constant 0 : index
    %c0_11 = arith.constant 0 : index
    %8 = vector.load %arg5[%c0_10, %c0_11] : memref<1x128xf32, #tpu.memory_space<vmem>>, vector<1x128xf32>
    %9 = vector.broadcast %8 : vector<1x128xf32> to vector<8x128xf32>
    %10 = arith.addf %7, %9 : vector<8x128xf32>
    %c0_12 = arith.constant 0 : index
    %c0_13 = arith.constant 0 : index
    %11 = vector.load %arg6[%c0_12, %c0_13] : memref<128x128xf32, #tpu.memory_space<vmem>>, vector<128x128xf32>
    %cst_14 = arith.constant dense<0.000000e+00> : vector<8x128xf32>
    %12 = tpu.matmul %3, %11, %cst_14 {dimension_numbers = #tpu.dot_dimension_numbers<[1], [0], [0], [1], [0, 0, 1, 1], [], []>} : vector<8x128xf32>, vector<128x128xf32>, vector<8x128xf32> -> vector<8x128xf32>
    %c0_15 = arith.constant 0 : index
    %c0_16 = arith.constant 0 : index
    %13 = vector.load %arg7[%c0_15, %c0_16] : memref<1x128xf32, #tpu.memory_space<vmem>>, vector<1x128xf32>
    %14 = vector.broadcast %13 : vector<1x128xf32> to vector<8x128xf32>
    %15 = arith.addf %12, %14 : vector<8x128xf32>
    %c0_17 = arith.constant 0 : index
    %c0_18 = arith.constant 0 : index
    %16 = vector.load %arg8[%c0_17, %c0_18] : memref<128x128xf32, #tpu.memory_space<vmem>>, vector<128x128xf32>
    %cst_19 = arith.constant dense<0.000000e+00> : vector<8x128xf32>
    %17 = tpu.matmul %5, %16, %cst_19 {dimension_numbers = #tpu.dot_dimension_numbers<[1], [0], [0], [1], [0, 0, 1, 1], [], []>} : vector<8x128xf32>, vector<128x128xf32>, vector<8x128xf32> -> vector<8x128xf32>
    %c0_20 = arith.constant 0 : index
    %c0_21 = arith.constant 0 : index
    %18 = vector.load %arg9[%c0_20, %c0_21] : memref<1x128xf32, #tpu.memory_space<vmem>>, vector<1x128xf32>
    %19 = vector.broadcast %18 : vector<1x128xf32> to vector<8x128xf32>
    %20 = arith.addf %17, %19 : vector<8x128xf32>
    %cst_22 = arith.constant dense<0.000000e+00> : vector<8x8xf32>
    %21 = tpu.matmul %10, %15, %cst_22 {dimension_numbers = #tpu.dot_dimension_numbers<[1], [1], [0], [0], [0, 0, 1, 0], [], []>} : vector<8x128xf32>, vector<8x128xf32>, vector<8x8xf32> -> vector<8x8xf32>
    %cst_23 = arith.constant dense<0xFF800000> : vector<8xf32>
    %22 = vector.multi_reduction <maximumf>, %21, %cst_23 [1] : vector<8x8xf32> to vector<8xf32>
    %23 = vector.shape_cast %22 : vector<8xf32> to vector<8x1xf32>
    %24 = vector.broadcast %23 : vector<8x1xf32> to vector<8x8xf32>
    %25 = arith.subf %21, %24 : vector<8x8xf32>
    %26 = math.exp %25 : vector<8x8xf32>
    %cst_24 = arith.constant dense<0.000000e+00> : vector<8xf32>
    %27 = vector.multi_reduction <add>, %26, %cst_24 [1] : vector<8x8xf32> to vector<8xf32>
    %28 = vector.shape_cast %27 : vector<8xf32> to vector<8x1xf32>
    %29 = tpu.reciprocal %28 {approx = true} : vector<8x1xf32> -> vector<8x1xf32>
    %30 = vector.broadcast %29 : vector<8x1xf32> to vector<8x8xf32>
    %31 = arith.mulf %26, %30 : vector<8x8xf32>
    %cst_25 = arith.constant dense<0.000000e+00> : vector<8x128xf32>
    %32 = tpu.matmul %31, %20, %cst_25 {dimension_numbers = #tpu.dot_dimension_numbers<[1], [0], [0], [1], [0, 0, 1, 1], [], []>} : vector<8x8xf32>, vector<8x128xf32>, vector<8x128xf32> -> vector<8x128xf32>
    %c0_26 = arith.constant 0 : index
    %c0_27 = arith.constant 0 : index
    %c0_28 = arith.constant 0 : index
    %33 = vector.load %arg10[%c0_26, %c0_27, %c0_28] : memref<1x8x128xf32, #tpu.memory_space<vmem>>, vector<1x8x128xf32>
    %34 = vector.shape_cast %33 : vector<1x8x128xf32> to vector<8x128xf32>
    %35 = vector.shape_cast %32 : vector<8x128xf32> to vector<1x8x128xf32>
    tpu.vector_store %arg10[%c0_26, %c0_27, %c0_28], %35 {strides = array<i32>} : memref<1x8x128xf32, #tpu.memory_space<vmem>>, vector<1x8x128xf32>,
    return
  }
  func.func @transform_0(%arg0: i32) -> (i32, i32, i32) {
    %c0_i32 = arith.constant 0 : i32
    %c0_i32_0 = arith.constant 0 : i32
    %c0_i32_1 = arith.constant 0 : i32
    return %arg0, %c0_i32, %c0_i32_0 : i32, i32, i32
  }
  func.func @transform_1(%arg0: i32) -> (i32, i32, i32) {
    %c0_i32 = arith.constant 0 : i32
    %c0_i32_0 = arith.constant 0 : i32
    %c0_i32_1 = arith.constant 0 : i32
    return %arg0, %c0_i32, %c0_i32_0 : i32, i32, i32
  }
  func.func @transform_2(%arg0: i32) -> (i32, i32, i32) {
    %c0_i32 = arith.constant 0 : i32
    %c0_i32_0 = arith.constant 0 : i32
    %c0_i32_1 = arith.constant 0 : i32
    return %arg0, %c0_i32, %c0_i32_0 : i32, i32, i32
  }
  func.func @transform_3(%arg0: i32) -> (i32, i32) {
    %c0_i32 = arith.constant 0 : i32
    %c0_i32_0 = arith.constant 0 : i32
    %c0_i32_1 = arith.constant 0 : i32
    return %c0_i32, %c0_i32_0 : i32, i32
  }
  func.func @transform_4(%arg0: i32) -> (i32, i32) {
    %c0_i32 = arith.constant 0 : i32
    %c0_i32_0 = arith.constant 0 : i32
    %c0_i32_1 = arith.constant 0 : i32
    return %c0_i32, %c0_i32_0 : i32, i32
  }
  func.func @transform_5(%arg0: i32) -> (i32, i32) {
    %c0_i32 = arith.constant 0 : i32
    %c0_i32_0 = arith.constant 0 : i32
    %c0_i32_1 = arith.constant 0 : i32
    return %c0_i32, %c0_i32_0 : i32, i32
  }
  func.func @transform_6(%arg0: i32) -> (i32, i32) {
    %c0_i32 = arith.constant 0 : i32
    %c0_i32_0 = arith.constant 0 : i32
    %c0_i32_1 = arith.constant 0 : i32
    return %c0_i32, %c0_i32_0 : i32, i32
  }
  func.func @transform_7(%arg0: i32) -> (i32, i32) {
    %c0_i32 = arith.constant 0 : i32
    %c0_i32_0 = arith.constant 0 : i32
    %c0_i32_1 = arith.constant 0 : i32
    return %c0_i32, %c0_i32_0 : i32, i32
  }
  func.func @transform_8(%arg0: i32) -> (i32, i32) {
    %c0_i32 = arith.constant 0 : i32
    %c0_i32_0 = arith.constant 0 : i32
    %c0_i32_1 = arith.constant 0 : i32
    return %c0_i32, %c0_i32_0 : i32, i32
  }
  func.func @transform_9(%arg0: i32) -> (i32, i32, i32) {
    %c0_i32 = arith.constant 0 : i32
    %c0_i32_0 = arith.constant 0 : i32
    %c0_i32_1 = arith.constant 0 : i32
    return %arg0, %c0_i32, %c0_i32_0 : i32, i32, i32
  }
}

</mosaic_0001>

<bundles_post_ra>
// kernel: attention_head_pallas.1
= control target key start
LH: loop header
LB: loop body
LE: loop exit
PB: predicated region body
PF: predicated region fallthrough
CT: control target
= control target key end

     0   :  { %14 = vsyncpa [#allocation3], 0  ;;  %s1622_s0 = inlined_call_operand.vmem [shape: f32[2,8,128], index: 0, kind: input, shape index: {}]   ;;  %s1623_s1 = inlined_call_operand.vmem [shape: f32[2,8,128], index: 1, kind: input, shape index: {}]   ;;  %s1624_s2 = inlined_call_operand.vmem [shape: f32[2,8,128], index: 2, kind: input, shape index: {}]   ;;  %s1625_s3 = inlined_call_operand.vmem [shape: f32[128,128], index: 3, kind: input, shape index: {}]   ;;  %s1626_s4 = inlined_call_operand.vmem [shape: f32[1,128], index: 4, kind: input, shape index: {}]   ;;  %s1627_s5 = inlined_call_operand.vmem [shape: f32[128,128], index: 5, kind: input, shape index: {}]   ;;  %s1628_s6 = inlined_call_operand.vmem [shape: f32[1,128], index: 6, kind: input, shape index: {}]   ;;  %s1629_s7 = inlined_call_operand.vmem [shape: f32[128,128], index: 7, kind: input, shape index: {}]   ;;  %s1630_s8 = inlined_call_operand.vmem [shape: f32[1,128], index: 8, kind: input, shape index: {}]   ;;  %s1631_s9 = inlined_call_operand.hbm [shape: f32[2,8,128], index: 9, kind: output, shape index: {}]  }
   0x1   :  { %16 = vsyncpa [#allocation3 + $0x1], 0  ;;  %s1319_s30 = smov 0   ;;  %s1321_s10 = smov 0  }
   0x2   :  { %s1323_s11 = smov 0   ;;  %s1325_s12 = smov 0  }
   0x3 LB: > { %s1340_s13 = sadd.s32 4294967295, %s1263_s12   ;;  %s897_s14 = sadd.s32 4294967294, %s1263_s12   ;;  %s1263_s12 = sphi %s1325_s12, %s1637_s12   ;;  %s1259_s11 = sphi %s1323_s11, %s1636_s11   ;;  %s1255_s10 = sphi %s1321_s10, %s1635_s10   ;;  %s1251_s30 = sphi %s1319_s30, %s1634_s30  }
   0x4   : > { %s1344_s15 = sadd.s32 1, %s1263_s12   ;;  %s233_s16 = sadd.s32 1, %s1259_s11 }
   0x5   : > { %s230_s17 = ssub.s32 %s1263_s12, %s1344_s15  ;;  %p243_p0 = scmp.ne.s32.totalorder %s1259_s11, %s1255_s10 }
   0x6   : > { %p231_p1 = scmp.eq.s32.totalorder %s230_s17, 0  ;;  %p244_p2 = scmp.eq.s32.totalorder %s1340_s13, 1 }
   0x7   : > { %p249_p3 = scmp.ne.s32.totalorder %s1255_s10, %s1251_s30  ;;  %p250_p4 = scmp.eq.s32.totalorder %s897_s14, 1 }
   0x8   : > { %s1355_s18 = scalar_select %p231_p1, %s1259_s11, %s233_s16  }
   0x9   : > { %p1357_p5 = por %p244_p2, %p243_p0  ;;  %p1361_p6 = por %p250_p4, %p249_p3 }
   0xa   : > { %p900_p7 = scmp.ge.s32.totalorder %s1263_s12, 1  ;;  %p307_p8 = scmp.lt.s32.totalorder %s1263_s12, 3 }
   0xc   : > { %p308_p9 = pnand %p900_p7, %p307_p8 }
   0xd   : > { %v458_v0 = vld [vmem:[%s1627_s5] sm:$0xff] (!%p308_p9)  ;;  %v459_v1 = vld [vmem:[%s1627_s5 + $0x8] sm:$0xff] (!%p308_p9)  ;;  %v1265_v3 = vmov (!%p308_p9), 0.0|0.0   ;;  %v460_v6 = vld [vmem:[%s1627_s5 + $0x10] sm:$0xff] (!%p308_p9)  ;;  %vm1266_vm0 = vmmov (!%p308_p9), 0   ;;  %v1267_v11 = vmov (!%p308_p9), 0.0  }
   0xe   : > { %311 = sbr.rel (%p308_p9) target bundleno = 1016 (0x3f8), region = 56  ;;  %v365_v2 = vld [vmem:[%s1625_s3] sm:$0xff] (!%p308_p9)  ;;  %1107 = vmatprep.subr.bf16.mxu1 (!%p308_p9), %v1265_v3  ;;  %v1108_v4 = vpack.c.bf16 (!%p308_p9), %v459_v1, %v458_v0  ;;  %1083 = vmatprep.subr.bf16.mxu0 (!%p308_p9), %v1265_v3  ;;  %v366_v5 = vld [vmem:[%s1625_s3 + $0x8] sm:$0xff] (!%p308_p9)  ;;  %v461_v7 = vld [vmem:[%s1627_s5 + $0x18] sm:$0xff] (!%p308_p9)  ;;  %p350_p10 = scmp.lt.s32.totalorder (!%p308_p9), %s1340_s13, 1  ;;  %vm714_vm1 = vcmask (!%p308_p9), 64512  }
   0xf   : > { %v1084_v8 = vpack.c.bf16 (!%p308_p9), %v366_v5, %v365_v2  ;;  %v367_v9 = vld [vmem:[%s1625_s3 + $0x10] sm:$0xff] (!%p308_p9)  ;;  %v368_v10 = vld [vmem:[%s1625_s3 + $0x18] sm:$0xff] (!%p308_p9)  ;;  %1035 = vmatprep.mubr.msk.f32.mxu1 (!%p308_p9), %vm1266_vm0, %v1267_v11  ;;  %1000 = vmatprep.mubr.msk.f32.mxu0 (!%p308_p9), %vm1266_vm0, %v1267_v11  ;;  %v1111_v12 = vpack.c.bf16 (!%p308_p9), %v461_v7, %v460_v6  ;;  %v462_v14 = vld [vmem:[%s1627_s5 + $0x20] sm:$0xff] (!%p308_p9) }
  0x10   : > { %1109 = vmatpush3.bf16.msra.mxu1 (!%p308_p9), %v1108_v4  ;;  %v1087_v13 = vpack.c.bf16 (!%p308_p9), %v368_v10, %v367_v9  ;;  %v463_v15 = vld [vmem:[%s1627_s5 + $0x28] sm:$0xff] (!%p308_p9)  ;;  %v369_v16 = vld [vmem:[%s1625_s3 + $0x20] sm:$0xff] (!%p308_p9)  ;;  %v464_v20 = vld [vmem:[%s1627_s5 + $0x30] sm:$0xff] (!%p308_p9) }
  0x11   : > { %1085 = vmatpush3.bf16.msra.mxu0 (!%p308_p9), %v1084_v8  ;;  %1110 = vmatprep.subr.bf16.mxu1 (!%p308_p9), %v1265_v3  ;;  %v370_v17 = vld [vmem:[%s1625_s3 + $0x28] sm:$0xff] (!%p308_p9)  ;;  %v1114_v18 = vpack.c.bf16 (!%p308_p9), %v463_v15, %v462_v14  ;;  %v465_v21 = vld [vmem:[%s1627_s5 + $0x38] sm:$0xff] (!%p308_p9)  ;;  %v371_v22 = vld [vmem:[%s1625_s3 + $0x30] sm:$0xff] (!%p308_p9) }
  0x12   : > { %1086 = vmatprep.subr.bf16.mxu0 (!%p308_p9), %v1265_v3  ;;  %v1090_v19 = vpack.c.bf16 (!%p308_p9), %v370_v17, %v369_v16  ;;  %v372_v23 = vld [vmem:[%s1625_s3 + $0x38] sm:$0xff] (!%p308_p9)  ;;  %v1117_v24 = vpack.c.bf16 (!%p308_p9), %v465_v21, %v464_v20  ;;  %v466_v26 = vld [vmem:[%s1627_s5 + $0x40] sm:$0xff] (!%p308_p9)  ;;  %v467_v27 = vld [vmem:[%s1627_s5 + $0x48] sm:$0xff] (!%p308_p9) }
  0x13   : > { %v1093_v25 = vpack.c.bf16 (!%p308_p9), %v372_v23, %v371_v22  ;;  %v373_v28 = vld [vmem:[%s1625_s3 + $0x40] sm:$0xff] (!%p308_p9)  ;;  %v374_v29 = vld [vmem:[%s1625_s3 + $0x48] sm:$0xff] (!%p308_p9)  ;;  %v1120_v30 = vpack.c.bf16 (!%p308_p9), %v467_v27, %v466_v26  ;;  %v468_v32 = vld [vmem:[%s1627_s5 + $0x50] sm:$0xff] (!%p308_p9) }
  0x14   : > { %1112 = vmatpush3.bf16.msra.mxu1 (!%p308_p9), %v1111_v12  ;;  %v1096_v31 = vpack.c.bf16 (!%p308_p9), %v374_v29, %v373_v28  ;;  %v469_v33 = vld [vmem:[%s1627_s5 + $0x58] sm:$0xff] (!%p308_p9)  ;;  %v375_v34 = vld [vmem:[%s1625_s3 + $0x50] sm:$0xff] (!%p308_p9)  ;;  %v470_v38 = vld [vmem:[%s1627_s5 + $0x60] sm:$0xff] (!%p308_p9) }
  0x15   : > { %1088 = vmatpush3.bf16.msra.mxu0 %v1087_v13  ;;  %1113 = vmatprep.subr.bf16.mxu1 %v1265_v3  ;;  %v376_v35 = vld [vmem:[%s1625_s3 + $0x58] sm:$0xff]  ;;  %v1123_v36 = vpack.c.bf16 %v469_v33, %v468_v32  ;;  %v471_v39 = vld [vmem:[%s1627_s5 + $0x68] sm:$0xff]  ;;  %v377_v40 = vld [vmem:[%s1625_s3 + $0x60] sm:$0xff]  ;;  %s351_s29 = scalar_select %p350_p10, %s1340_s13, 1 }
  0x16   : > { %1089 = vmatprep.subr.bf16.mxu0 %v1265_v3  ;;  %v1099_v37 = vpack.c.bf16 %v376_v35, %v375_v34  ;;  %v378_v41 = vld [vmem:[%s1625_s3 + $0x68] sm:$0xff]  ;;  %v1126_v42 = vpack.c.bf16 %v471_v39, %v470_v38  ;;  %v472_v44 = vld [vmem:[%s1627_s5 + $0x70] sm:$0xff]  ;;  %v473_v45 = vld [vmem:[%s1627_s5 + $0x78] sm:$0xff] }
  0x17   : > { %v1102_v43 = vpack.c.bf16 %v378_v41, %v377_v40  ;;  %v379_v46 = vld [vmem:[%s1625_s3 + $0x70] sm:$0xff]  ;;  %v380_v47 = vld [vmem:[%s1625_s3 + $0x78] sm:$0xff]  ;;  %s1483_s26 = sshll.u32 %s351_s29, 3  ;;  %v1129_v48 = vpack.c.bf16 %v473_v45, %v472_v44  ;;  %v906_v52 = vld [vmem:[%s1628_s6] ss:$0 sm:$0xff]  ;;  %s910_s29 = sshll.u32 %s1340_s13, 7 }
  0x18   : > { %1115 = vmatpush3.bf16.msra.mxu1 %v1114_v18  ;;  %v1105_v49 = vpack.c.bf16 %v380_v47, %v379_v46  ;;  %s357_s14 = scalar_lea.vmem %s1623_s1, %s1483_s26  ;;  %s353_s21 = scalar_lea.vmem %s1622_s0, %s1483_s26  ;;  %v905_v53 = vld [vmem:[%s1626_s4] ss:$0 sm:$0xff]  ;;  %v552_v61 = vld [vmem:[%s1629_s7 + $0x8] sm:$0xff]  ;;  %v553_v62 = vld [vmem:[%s1629_s7 + $0x10] sm:$0xff] }
  0x19   : > { %1091 = vmatpush3.bf16.msra.mxu0 %v1090_v19  ;;  %1116 = vmatprep.subr.bf16.mxu1 %v1265_v3  ;;  %v363_v50 = vld [vmem:[%s357_s14] sm:$0xff]  ;;  %v554_v0 = vld [vmem:[%s1629_s7 + $0x18] sm:$0xff]  ;;  %v556_v4 = vld [vmem:[%s1629_s7 + $0x28] sm:$0xff]  ;;  %s361_s27 = scalar_lea.vmem %s1624_s2, %s1483_s26  ;;  %s347_s14 = sand.u32 1, %s1255_s10  }
  0x1a   : > { %1092 = vmatprep.subr.bf16.mxu0 %v1265_v3  ;;  %v362_v51 = vld [vmem:[%s353_s21] sm:$0xff]  ;;  %v1135_v1 = vpack.c.bf16 %v554_v0, %v553_v62  ;;  %v557_v6 = vld [vmem:[%s1629_s7 + $0x30] sm:$0xff]  ;;  %v558_v7 = vld [vmem:[%s1629_s7 + $0x38] sm:$0xff]  ;;  %s901_s16 = sshll.u32 %s347_s14, 3  ;;  %s1582_s24 = scalar_lea.hbm %s1631_s9, %s910_s29 }
  0x1b   : > { %v551_v60 = vld [vmem:[%s1629_s7] sm:$0xff]  ;;  %v1141_v8 = vpack.c.bf16 %v558_v7, %v557_v6  ;;  %v560_v10 = vld [vmem:[%s1629_s7 + $0x48] sm:$0xff]  ;;  %v561_v12 = vld [vmem:[%s1629_s7 + $0x50] sm:$0xff]  ;;  %s349_s17 = scalar_lea.vmem [#allocation2], %s901_s16  ;;  %s801_s25 = scalar_lea.sflag [#allocation3], %s347_s14 }
  0x1c   : > { %1118 = vmatpush3.bf16.msra.mxu1 %v1117_v24  ;;  %v1132_v63 = vpack.c.bf16 %v552_v61, %v551_v60  ;;  %v555_v2 = vld [vmem:[%s1629_s7 + $0x20] sm:$0xff]  ;;  %v562_v13 = vld [vmem:[%s1629_s7 + $0x58] sm:$0xff]  ;;  %v564_v16 = vld [vmem:[%s1629_s7 + $0x68] sm:$0xff]  ;;  %s814_s21 = sshll.u32 %s349_s17, 4  ;;  %s1268_s13 = smov [#allocation2]   ;;  %s1577_s21 = int_to_ptr.vmem [resolvable:$true] %s814_s21 }
  0x1d   : > { %1094 = vmatpush3.bf16.msra.mxu0 %v1093_v25  ;;  %1119 = vmatprep.subr.bf16.mxu1 %v1265_v3  ;;  %v1138_v5 = vpack.c.bf16 %v556_v4, %v555_v2  ;;  %v559_v9 = vld [vmem:[%s1629_s7 + $0x40] sm:$0xff]  ;;  %v1147_v14 = vpack.c.bf16 %v562_v13, %v561_v12  ;;  %v565_v18 = vld [vmem:[%s1629_s7 + $0x70] sm:$0xff]  ;;  %v566_v19 = vld [vmem:[%s1629_s7 + $0x78] sm:$0xff]  ;;  %s1205_s26 = sshll.u32 %s1268_s13, 4  ;;  %s1206_s26 = int_to_ptr.vmem [resolvable:$false] %s1205_s26 }
  0x1e   : > { %1095 = vmatprep.subr.bf16.mxu0 %v1265_v3  ;;  %v563_v15 = vld [vmem:[%s1629_s7 + $0x60] sm:$0xff]  ;;  %v1153_v20 = vpack.c.bf16 %v566_v19, %v565_v18  ;;  %s1207_s28 = scalar_lea.vmem %s1206_s26, 256  ;;  %p1208_p0 = scmp.lt.s32.totalorder %s1577_s21, %s1206_s26 }
  0x1f   : > { %v1150_v17 = vpack.c.bf16 %v564_v16, %v563_v15  ;;  %v364_v21 = vld [vmem:[%s361_s27] sm:$0xff]  ;;  %s1201_s27 = scalar_lea.vmem %s1577_s21, 128 }
  0x20   : > { %1121 = vmatpush3.bf16.msra.mxu1 %v1120_v30  ;;  %v907_v30 = vld [vmem:[%s1630_s8] ss:$0 sm:$0xff]  ;;  %p1202_p11 = scmp.ne.s32.totalorder %s1577_s21, %s1201_s27  ;;  %p1209_p1 = scmp.lt.s32.totalorder %s1207_s28, %s1201_s27 }
  0x21   : > { %1097 = vmatpush3.bf16.msra.mxu0 %v1096_v31  ;;  %1122 = vmatprep.subr.bf16.mxu1 %v1265_v3 }
  0x22   : > { %1098 = vmatprep.subr.bf16.mxu0 %v1265_v3  ;;  %p1203_p12 = pnand %p1202_p11, %p1357_p5  ;;  %p1210_p2 = por %p1209_p1, %p1208_p0 }
  0x24   : > { %1124 = vmatpush3.bf16.msra.mxu1 %v1123_v36  ;;  %p1204_p13 = pneg %p1203_p12 }
  0x25   : > { %1100 = vmatpush3.bf16.msra.mxu0 %v1099_v37  ;;  %1125 = vmatprep.subr.bf16.mxu1 %v1265_v3 }
  0x26   : > { %1101 = vmatprep.subr.bf16.mxu0 %v1265_v3  ;;  %p1211_p3 = pnand %p1210_p2, %p1204_p13 }
  0x28   : > { %1127 = vmatpush3.bf16.msra.mxu1 %v1126_v42 }
  0x29   : > { %1103 = vmatpush3.bf16.msra.mxu0 %v1102_v43  ;;  %1128 = vmatprep.subr.bf16.mxu1 %v1265_v3 }
  0x2a   : > { %1104 = vmatprep.subr.bf16.mxu0 %v1265_v3 }
  0x2c   : > { %1130 = vmatpush3.bf16.msra.mxu1 %v1129_v48 }
  0x2d   : > { %1106 = vmatpush3.bf16.msra.mxu0 %v1105_v49  ;;  %1073 = vmatprep.subr.mxu1 %v1267_v11 }
  0x2e   : > { %1131 = vmatprep.subr.bf16.mxu0 %v1265_v3 }
  0x2f   : > { %1036 = vmatmul.mubr.f32.vlgmr.msra.gmra.mrb[0].mxu1 %v363_v50 }
  0x30   : > { %1001 = vmatmul.mubr.f32.vlgmr.msra.gmra.mrb[0].mxu0 %v362_v51  ;;  %1075 = vmatprep.mubr.msk.f32.mxu1 %vm1266_vm0, %v1267_v11 }
  0x31   : > { %1070 = vmatprep.mubr.msk.f32.mxu0 %vm1266_vm0, %v1267_v11  ;;  %1133 = vmatpush3.bf16.msra.mxu0 %v1132_v63 }
  0x32   : > { %1134 = vmatprep.subr.bf16.mxu0 %v1265_v3 }
  0x35   : > { %1136 = vmatpush3.bf16.msra.mxu0 %v1135_v1 }
  0x36   : > { %1137 = vmatprep.subr.bf16.mxu0 %v1265_v3 }
  0x39   : > { %1139 = vmatpush3.bf16.msra.mxu0 %v1138_v5 }
  0x3a   : > { %1140 = vmatprep.subr.bf16.mxu0 %v1265_v3 }
  0x3d   : > { %1142 = vmatpush3.bf16.msra.mxu0 %v1141_v8 }
  0x3e   : > { %1143 = vmatprep.subr.bf16.mxu0 %v1265_v3 }
 0x102   : > { %v547_v54 = vpop.f32.mrb[0].mxu1 }
 0x103   : > { %v548_v55 = vadd.f32 %v906_v52, %v547_v54  ;;  %v1037_v56 = vpop.f32.mrb[1].mxu1  ;;  %v454_v57 = vpop.f32.mrb[0].mxu0 }
 0x104   : > { %v455_v58 = vadd.f32 %v905_v53, %v454_v57  ;;  %v1002_v59 = vpop.f32.mrb[1].mxu0 }
 0x105   : > { %1074 = vmatpush3.xpose.msra.mxu1 %v548_v55 }
 0x106   : > { %1078 = vmatprep.subr.mxu1 %v1267_v11 }
 0x108   : > { %1076 = vmatmul.mubr.f32.vlgmr.msra.gmra.mrb[2].mxu1 %v455_v58 }
 0x109   : > { %1080 = vmatprep.mubr.msk.f32.mxu1 %vm1266_vm0, %v1267_v11  ;;  %v1144_v11 = vpack.c.bf16 %v560_v10, %v559_v9 }
 0x10b   : > { %1145 = vmatpush3.bf16.msra.mxu0 %v1144_v11 }
 0x10c   : > { %1146 = vmatprep.subr.bf16.mxu0 %v1265_v3 }
 0x10f   : > { %1148 = vmatpush3.bf16.msra.mxu0 %v1147_v14 }
 0x110   : > { %1149 = vmatprep.subr.bf16.mxu0 %v1265_v3 }
 0x113   : > { %1151 = vmatpush3.bf16.msra.mxu0 %v1150_v17 }
 0x114   : > { %1152 = vmatprep.subr.bf16.mxu0 %v1265_v3 }
 0x117   : > { %1154 = vmatpush3.bf16.msra.mxu0 %v1153_v20 }
 0x11a   : > { %1071 = vmatmul.mubr.f32.vlgmr.msra.gmra.mrb[2].mxu0 %v364_v21 }
 0x1db   : > { %v710_v22 = vpop.f32.mrb[2].mxu1 }
 0x1dc   : > { %v1077_v23 = vpop.f32.mrb[3].mxu1  ;;  %v715_v24 = vsel %vm714_vm1, %v710_v22, -inf }
 0x1dd   : > { %716 = vmax.xlane.f32.xlu0 %v715_v24 }
 0x1ed   : > { %v640_v29 = vpop.f32.mrb[2].mxu0 }
 0x1ee   : > { %v1072_v31 = vpop.f32.mrb[3].mxu0  ;;  %v641_v32 = vadd.f32 %v907_v30, %v640_v29 }
 0x1f0   : > { %1079 = vmatpush3.msra.mxu1 %v641_v32 }
 0x26a   : > { %v717_v25 = vpop.xlane.xlu0 %716 }
 0x26b   : > { %v718_v26 = vsub.f32 %v710_v22, %v717_v25 }
 0x26d   : > { %v719_v27 = vmul.f32 1.442695, %v718_v26 }
 0x26f   : > { %1197 = vpow2.f32 %v719_v27 }
 0x279   : > { %v1198_v28 = vpop.eup %1197 }
 0x27a   : > { %v721_v3 = vsel %vm714_vm1, %v1198_v28, 0.0 }
 0x27b   : > { %722 = vadd.xlane.f32.xlu0 %v721_v3 }
 0x308   : > { %v723_v33 = vpop.xlane.xlu0 %722 }
 0x309   : > { %1199 = vrcp.f32 %v723_v33 }
 0x313   : > { %v1200_v34 = vpop.eup %1199 }
 0x314   : > { %v725_v35 = vmul.f32 %v1200_v34, %v1198_v28 }
 0x316   : > { %1081 = vmatmul.mubr.msk.f32.vlgmr.msra.gmra.mrb[4].mxu1 %vm714_vm1, %v725_v35 }
 0x3e9   : > { %v795_v36 = vpop.f32.mrb[4].mxu1 }
 0x3ea   : > { %799 = vst [vmem:[%s349_s17] sm:$0xff] %v795_v36  ;;  %v1082_v37 = vpop.f32.mrb[5].mxu1 }
 0x3eb   : > { %1214 = shalt.err (!%p1211_p3)
}
 0x3ec   : > { %s1215_s14 = scalar_lea.hbm %s1582_s24, 128  ;;  %s1219_s29 = scalar_lea.hbm %s1631_s9, 256 }
 0x3ed   : > { %p1216_p4 = scmp.ne.s32.totalorder %s1582_s24, %s1215_s14  ;;  %p1220_p9 = scmp.lt.u32.totalorder %s1582_s24, %s1631_s9 }
 0x3ee   : > { %p1221_p10 = scmp.lt.u32.totalorder %s1219_s29, %s1215_s14  ;;  %p1223_p12 = scmp.lt.u32.totalorder %s1215_s14, %s1582_s24 }
 0x3ef   : > { %p1217_p7 = pnand %p1216_p4, %p1357_p5 }
 0x3f0   : > { %p1222_p11 = por %p1221_p10, %p1220_p9 }
 0x3f1   : > { %p1218_p8 = pneg %p1217_p7 }
 0x3f2   : > { %p1224_p13 = por %p1223_p12, %p1222_p11 }
 0x3f4   : > { %p1225_p0 = pnand %p1224_p13, %p1218_p8 }
 0x3f6   : > { %1228 = shalt.err (!%p1225_p0)
}
 0x3f7   : > { %1155 = dma.vmem_to_hbm [thread:$0]  (%p1357_p5), %s1577_s21, 128, %s1582_s24, %s801_s25  }
 0x3f8 PF: > { %p1161_p1 = scmp.ge.s32.totalorder %s1263_s12, 2  ;;  %s826_s27 = sand.u32 1, %s1251_s30  }
 0x3f9   : > { %s827_s13 = scalar_lea.sflag [#allocation3], %s826_s27 }
 0x3fa   : > { %p1158_p2 = pnand %p1161_p1, %p1361_p6 }
 0x3fc   : > { %1246 = dma.done.wait (!%p1158_p2), %s827_s13, 128  }
 0x3fd   : > { %1248 = vsyncadd (!%p1158_p2), %s827_s13, 4294967168  ;;  %p19_p3 = scmp.ge.s32.totalorder %s1344_s15, 4   ;;  %s1634_s30 = smov %s1255_s10 }
 0x3fe   : > { %s1635_s10 = smov %s1259_s11  ;;  %s1636_s11 = smov %s1355_s18 }
 0x3ff   : > { %s1637_s12 = smov %s1344_s15  ;;  %21 = sbr.rel (!%p19_p3) target bundleno = 3 (0x3), region = 97 }
 0x406   :  { %832 = vsyncpa [#allocation3], 1 }
 0x407   :  { %834 = vsyncpa [#allocation3 + $0x1], 1 }

</bundles_post_ra>
